<compile_context>
chip_gen: v7x
topology: tpu7x:2x2x1
jax: 0.10.0
libtpu: 0.0.40
codegen_flags: <defaults>
</compile_context>

<pallas_src>
import jax
import jax.numpy as jnp
from jax.experimental import pallas as pl
from jax.experimental.pallas import tpu as pltpu

_LANES = 128
_SUBLANES = 8
_NUM_SPLITS = 2  # leading "parallel" grid axis -> both TensorCores on v7x


def _cdiv(a, b):
    return -(-a // b)


def _round_up(a, b):
    return _cdiv(a, b) * b


def _budgets():
    """Generation-gated (per-input block budget bytes, vmem_limit_bytes)."""
    vmem_cap = None
    try:
        info = pltpu.get_tpu_info()
        vmem_cap = getattr(info, "vmem_capacity_bytes", None)
    except Exception:
        vmem_cap = None
    if vmem_cap is None:
        vmem_cap = 64 * 1024 * 1024  # conservative: assume v7x-class VMEM
    if vmem_cap >= 100 * 1024 * 1024:
        # v5e / v6e: 128 MiB physical VMEM -> bigger blocks are free.
        return 12 * 1024 * 1024, 96 * 1024 * 1024
    # v7x-class: 64 MiB physical VMEM.
    return 8 * 1024 * 1024, 48 * 1024 * 1024


def _single_block_kernel(y_ref, a_ref, out_ref):
    """Whole (padded) array in one VMEM block: direct sum of squared diffs."""
    d = a_ref[...].astype(jnp.float32) - y_ref[...].astype(jnp.float32)
    out_ref[0, 0] = jnp.sum(d * d)


def _stream_kernel(y_ref, a_ref, out_ref):
    """Streaming reduction; out_ref is a per-split (8,128) partial-sum block."""
    @pl.when(pl.program_id(1) == 0)
    def _init():
        out_ref[...] = jnp.zeros_like(out_ref)

    d = a_ref[...].astype(jnp.float32) - y_ref[...].astype(jnp.float32)
    d2 = d * d
    # VPU-only fold of (rows, 128) -> (8, 128); rows is a multiple of 8 so the
    # reshape maps exactly onto the native (8,128) sublane tiling.
    out_ref[...] += jnp.sum(d2.reshape(-1, _SUBLANES, _LANES), axis=0)


def _flatten_pad(x, n_total):
    """Ravel, zero-pad to n_total elements and view as (n_total/128, 128)."""
    flat = x.reshape(-1)
    pad = n_total - flat.shape[0]
    if pad:
        flat = jnp.pad(flat, (0, pad))  # zeros -> diff 0 -> contributes 0
    return flat.reshape(n_total // _LANES, _LANES)


def mc_policy_gradient_loss(y, action, reward, *, block_budget_bytes=None):
    """Pallas-backed equivalent of MonteCarloPolicyGradientLossFunc()(y, action, reward)."""
    assert y.shape == action.shape, "y and action must have identical shapes"
    if y.dtype != action.dtype:
        dt = jnp.promote_types(y.dtype, action.dtype)
        y, action = y.astype(dt), action.astype(dt)

    n = int(y.size)
    itemsize = jnp.dtype(y.dtype).itemsize
    budget, vmem_limit = _budgets()
    if block_budget_bytes is not None:
        budget = int(block_budget_bytes)

    rows_needed = _cdiv(n, _LANES)
    max_rows = max(_SUBLANES, (budget // (_LANES * itemsize)) // _SUBLANES * _SUBLANES)

    if rows_needed <= max_rows:
        # ---- Fast path: whole array fits a single block (e.g. the 8x256 case).
        r_pad = _round_up(rows_needed, _SUBLANES)
        n_pad = r_pad * _LANES
        y2 = _flatten_pad(y, n_pad)
        a2 = _flatten_pad(action, n_pad)
        ssum = pl.pallas_call(
            _single_block_kernel,
            out_shape=jax.ShapeDtypeStruct((1, 1), jnp.float32),
            grid_spec=pltpu.PrefetchScalarGridSpec(
                num_scalar_prefetch=0,
                grid=(1,),
                in_specs=[
                    pl.BlockSpec((r_pad, _LANES), lambda i: (0, 0)),
                    pl.BlockSpec((r_pad, _LANES), lambda i: (0, 0)),
                ],
                out_specs=pl.BlockSpec(memory_space=pltpu.SMEM),
            ),
            compiler_params=pltpu.CompilerParams(
                dimension_semantics=("arbitrary",),
                vmem_limit_bytes=vmem_limit,
            ),
            cost_estimate=pl.CostEstimate(
                flops=3 * n_pad, transcendentals=0,
                bytes_accessed=2 * n_pad * itemsize),
        )(y2, a2)[0, 0]
    else:
        # ---- Streaming path: contiguous (rows_per_block, 128) blocks,
        # two-way split across a "parallel" leading grid axis.
        rows_per_block = max_rows
        blocks_total = _round_up(_cdiv(rows_needed, rows_per_block), _NUM_SPLITS)
        blocks_per_split = blocks_total // _NUM_SPLITS
        r_pad = blocks_total * rows_per_block
        n_pad = r_pad * _LANES
        y2 = _flatten_pad(y, n_pad)
        a2 = _flatten_pad(action, n_pad)

        def in_map(c, k):
            return (c * blocks_per_split + k, 0)

        partials = pl.pallas_call(
            _stream_kernel,
            out_shape=jax.ShapeDtypeStruct((_NUM_SPLITS * _SUBLANES, _LANES),
                                           jnp.float32),
            grid_spec=pltpu.PrefetchScalarGridSpec(
                num_scalar_prefetch=0,
                grid=(_NUM_SPLITS, blocks_per_split),
                in_specs=[
                    pl.BlockSpec((rows_per_block, _LANES), in_map),
                    pl.BlockSpec((rows_per_block, _LANES), in_map),
                ],
                out_specs=pl.BlockSpec((_SUBLANES, _LANES),
                                       lambda c, k: (c, 0)),
            ),
            compiler_params=pltpu.CompilerParams(
                dimension_semantics=("parallel", "arbitrary"),
                vmem_limit_bytes=vmem_limit,
            ),
            cost_estimate=pl.CostEstimate(
                flops=3 * n_pad, transcendentals=0,
                bytes_accessed=2 * n_pad * itemsize),
        )(y2, a2)
        ssum = jnp.sum(partials)

    reward_f = jnp.asarray(reward, jnp.float32)
    return (ssum / jnp.float32(n)) * reward_f


if __name__ == "__main__":
    key = jax.random.PRNGKey(0)
    k1, k2, k3, k4, k5, k6 = jax.random.split(key, 6)

    # 1) Module-consistent small case (batch=8, features=256) -> fast path.
    B, D = 8, 256
    y = jax.random.normal(k1, (B, D), dtype=jnp.float32)
    action = jax.random.normal(k2, (B, D), dtype=jnp.float32)
    reward = jnp.float32(0.75)
    loss = jax.block_until_ready(mc_policy_gradient_loss(y, action, reward))
    ref = jnp.mean((action - y) ** 2) * reward
    assert jnp.allclose(loss, ref, rtol=1e-6, atol=1e-6), (loss, ref)

    # 2) Non-aligned shape with a tiny forced budget -> streaming path
    #    (exercises flatten/pad/split/grid accumulation).
    y2 = jax.random.normal(k3, (7, 300), dtype=jnp.float32)
    a2 = jax.random.normal(k4, (7, 300), dtype=jnp.float32)
    loss2 = jax.block_until_ready(
        mc_policy_gradient_loss(y2, a2, 1.5, block_budget_bytes=4096))
    ref2 = jnp.mean((a2 - y2) ** 2) * jnp.float32(1.5)
    assert jnp.allclose(loss2, ref2, rtol=1e-5, atol=1e-6), (loss2, ref2)

    # 3) bf16 inputs, streaming path (f32 accumulation inside the kernel).
    y3 = jax.random.normal(k5, (16, 512), dtype=jnp.bfloat16)
    a3 = jax.random.normal(k6, (16, 512), dtype=jnp.bfloat16)
    loss3 = jax.block_until_ready(
        mc_policy_gradient_loss(y3, a3, 0.5, block_budget_bytes=2048))
    ref3 = jnp.mean((a3.astype(jnp.float32) - y3.astype(jnp.float32)) ** 2) * 0.5
    assert jnp.allclose(loss3, ref3, rtol=1e-5, atol=1e-6), (loss3, ref3)

    print("KERNEL_OK")
</pallas_src>

<mosaic_0001>
module attributes {stable_mosaic.version = 11 : i64} {
  func.func @_single_block_kernel(%arg0: i32, %arg1: memref<16x128xf32, #tpu.memory_space<vmem>>, %arg2: memref<16x128xf32, #tpu.memory_space<vmem>>, %arg3: memref<1x1xf32, #tpu.memory_space<smem>>) attributes {dimension_semantics = [#tpu.dimension_semantics<arbitrary>], iteration_bounds = array<i64: 1>, scalar_prefetch = 0 : i64, scratch_operands = 0 : i64, tpu.core_type = #tpu.core_type<tc>, window_params = [{pipeline_mode = #tpu.pipeline_mode<synchronous>, transform_indices = @transform_0, window_bounds = array<i64: 16, 128>}, {pipeline_mode = #tpu.pipeline_mode<synchronous>, transform_indices = @transform_1, window_bounds = array<i64: 16, 128>}, {transform_indices = @transform_2, window_bounds = array<i64: 1, 1>}]} {
    %c0 = arith.constant 0 : index
    %c0_0 = arith.constant 0 : index
    %0 = vector.load %arg2[%c0, %c0_0] : memref<16x128xf32, #tpu.memory_space<vmem>>, vector<16x128xf32>
    %c0_1 = arith.constant 0 : index
    %c0_2 = arith.constant 0 : index
    %1 = vector.load %arg1[%c0_1, %c0_2] : memref<16x128xf32, #tpu.memory_space<vmem>>, vector<16x128xf32>
    %2 = arith.subf %0, %1 : vector<16x128xf32>
    %3 = arith.mulf %2, %2 : vector<16x128xf32>
    %4 = vector.shape_cast %3 : vector<16x128xf32> to vector<1x16x128xf32>
    %cst = arith.constant dense<0.000000e+00> : vector<1xf32>
    %5 = vector.multi_reduction <add>, %4, %cst [1, 2] : vector<1x16x128xf32> to vector<1xf32>
    %6 = vector.shape_cast %5 : vector<1xf32> to vector<1x1x1xf32>
    %7 = vector.extract %6[0, 0, 0] : f32 from vector<1x1x1xf32>
    %c0_3 = arith.constant 0 : index
    %c0_4 = arith.constant 0 : index
    %8 = memref.load %arg3[%c0_3, %c0_4] : memref<1x1xf32, #tpu.memory_space<smem>>
    memref.store %7, %arg3[%c0_3, %c0_4] : memref<1x1xf32, #tpu.memory_space<smem>>
    return
  }
  func.func @transform_0(%arg0: i32) -> (i32, i32) {
    %c0_i32 = arith.constant 0 : i32
    %c0_i32_0 = arith.constant 0 : i32
    %c0_i32_1 = arith.constant 0 : i32
    return %c0_i32, %c0_i32_0 : i32, i32
  }
  func.func @transform_1(%arg0: i32) -> (i32, i32) {
    %c0_i32 = arith.constant 0 : i32
    %c0_i32_0 = arith.constant 0 : i32
    %c0_i32_1 = arith.constant 0 : i32
    return %c0_i32, %c0_i32_0 : i32, i32
  }
  func.func @transform_2(%arg0: i32) -> (i32, i32) {
    %c0_i32 = arith.constant 0 : i32
    %c0_i32_0 = arith.constant 0 : i32
    %c0_i32_1 = arith.constant 0 : i32
    return %c0_i32, %c0_i32_0 : i32, i32
  }
}

</mosaic_0001>

<bundles_post_ra>
// kernel: tpu_custom_call.1
= control target key start
LH: loop header
LB: loop body
LE: loop exit
PB: predicated region body
PF: predicated region fallthrough
CT: control target
= control target key end

     0   :  { %7 = vsyncpa [#allocation3], 0  ;;  %s198_s0 = inlined_call_operand.hbm [shape: f32[16,128], index: 0, kind: input, shape index: {}]   ;;  %s199_s1 = inlined_call_operand.hbm [shape: f32[16,128], index: 1, kind: input, shape index: {}]   ;;  %s200_s2 = inlined_call_operand.hbm [shape: f32[1,1], index: 2, kind: output, shape index: {}]  }
   0x1   :  { %8 = vsyncpa [#allocation6], 0 }
   0x2   :  { %9 = vsyncpa [#allocation4], 0  ;;  %s142_s9 = smov [#allocation2]   ;;  %s82_s13 = scalar_lea.hbm %s198_s0, 256 }
   0x3   :  { %s15_s10 = sshll.u32 %s142_s9, 4  ;;  %p83_p0 = scmp.ne.s32.totalorder %s198_s0, %s82_s13  ;;  %s16_s10 = int_to_ptr.vmem [resolvable:$true] %s15_s10 }
   0x4   :  { %p86_p1 = scmp.lt.u32.totalorder %s82_s13, %s198_s0 }
   0x6   :  { %p88_p2 = pnand %p86_p1, %p83_p0 }
   0x8   :  { %91 = shalt.err (!%p88_p2)
}
   0x9   :  { %s92_s18 = scalar_lea.vmem %s16_s10, 256  ;;  %p97_p4 = scmp.lt.s32.totalorder %s16_s10, %s16_s10 }
   0xa   :  { %p93_p3 = scmp.ne.s32.totalorder %s16_s10, %s92_s18  ;;  %p98_p5 = scmp.lt.s32.totalorder %s92_s18, %s92_s18 }
   0xc   :  { %p99_p6 = por %p98_p5, %p97_p4 }
   0xe   :  { %p100_p7 = pnand %p99_p6, %p93_p3 }
  0x10   :  { %103 = shalt.err (!%p100_p7)
}
  0x11   :  { %s143_s19 = smov 128   ;;  %s144_s20 = smov 8  }
  0x12   :  { %21 = dma.hbm_to_vmem [thread:$0]  %s198_s0, 256, %s16_s10, [#allocation3], %s143_s19, %s143_s19, %s144_s20  }
  0x13   :  { %s145_s23 = smov [#allocation5]   ;;  %s104_s27 = scalar_lea.hbm %s199_s1, 256 }
  0x14   :  { %s27_s24 = sshll.u32 %s145_s23, 4  ;;  %p105_p8 = scmp.ne.s32.totalorder %s199_s1, %s104_s27  ;;  %s28_s24 = int_to_ptr.vmem [resolvable:$true] %s27_s24 }
  0x15   :  { %p108_p9 = scmp.lt.u32.totalorder %s104_s27, %s199_s1 }
  0x17   :  { %p110_p10 = pnand %p108_p9, %p105_p8 }
  0x19   :  { %113 = shalt.err (!%p110_p10)
}
  0x1a   :  { %s114_s4 = scalar_lea.vmem %s28_s24, 256  ;;  %p119_p12 = scmp.lt.s32.totalorder %s28_s24, %s28_s24 }
  0x1b   :  { %p115_p11 = scmp.ne.s32.totalorder %s28_s24, %s114_s4  ;;  %p120_p13 = scmp.lt.s32.totalorder %s114_s4, %s114_s4 }
  0x1d   :  { %p121_p0 = por %p120_p13, %p119_p12 }
  0x1f   :  { %p122_p1 = pnand %p121_p0, %p115_p11 }
  0x21   :  { %125 = shalt.err (!%p122_p1)
}
  0x22   :  { %33 = dma.hbm_to_vmem [thread:$0]  %s199_s1, 256, %s28_s24, [#allocation6], %s143_s19, %s143_s19, %s144_s20  }
  0x23   :  { %136 = dma.done.wait [#allocation3], 256  }
  0x24   :  { %137 = vsyncadd [#allocation3], 4294967040 }
  0x25   :  { %138 = dma.done.wait [#allocation6], 256  }
  0x26   :  { %139 = vsyncadd [#allocation6], 4294967040  ;;  %v40_v0 = vld [vmem:[#allocation5] sm:$0xff]  ;;  %v41_v1 = vld [vmem:[#allocation5 + $0x8] sm:$0xff]  ;;  %s126_s8 = scalar_lea.hbm %s200_s2, 16 }
  0x27   :  { %v42_v2 = vld [vmem:[#allocation2] sm:$0xff]  ;;  %v43_v3 = vld [vmem:[#allocation2 + $0x8] sm:$0xff]  ;;  %p127_p2 = scmp.ne.s32.totalorder %s200_s2, %s126_s8  ;;  %p130_p3 = scmp.lt.u32.totalorder %s126_s8, %s200_s2 }
  0x28   :  { %v44_v4 = vsub.f32 %v40_v0, %v42_v2  ;;  %v45_v5 = vsub.f32 %v41_v1, %v43_v3 }
  0x29   :  { %p132_p4 = pnand %p130_p3, %p127_p2 }
  0x2a   :  { %v46_v6 = vmul.f32 %v44_v4, %v44_v4  ;;  %v47_v7 = vmul.f32 %v45_v5, %v45_v5 }
  0x2c   :  { %v48_v8 = vadd.f32 %v47_v7, %v46_v6 }
  0x2e   :  { %49 = vadd.xlane.f32.xlu0 %v48_v8 }
  0xbb   :  { %v50_v9 = vpop.xlane.xlu0 %49 }
  0xbc   :  { %v51_v10 = vrot.slane %v50_v9, 4 }
  0xbe   :  { %v52_v11 = vadd.f32 %v51_v10, %v50_v9 }
  0xc0   :  { %v53_v12 = vrot.slane %v52_v11, 2 }
  0xc2   :  { %v54_v13 = vadd.f32 %v53_v12, %v52_v11 }
  0xc4   :  { %v55_v14 = vrot.slane %v54_v13, 1 }
  0xc6   :  { %v56_v15 = vadd.f32 %v55_v14, %v54_v13 }
  0xc8   :  { %75 = vpush %v56_v15 }
  0xf9   :  { %s76_s1 = spop %75 }
  0xfa   :  { %59 = sst [smem:[#allocation7]] %s76_s1 }
  0xfb   :  { %135 = shalt.err (!%p132_p4)
}
  0xfc   :  { %s146_s13 = smov [#allocation7]  }
  0xfd   :  { %67 = dma.smem_to_hbm %s146_s13, 16, %s200_s2, [#allocation4]  }
  0xfe   :  { %140 = dma.done.wait [#allocation4], 16  }
  0xff   :  { %141 = vsyncadd [#allocation4], 4294967280 }
 0x100   :  { %71 = sfence }
 0x101   :  { %72 = vsyncpa [#allocation3], 1 }
 0x102   :  { %73 = vsyncpa [#allocation6], 1 }
 0x103   :  { %74 = vsyncpa [#allocation4], 1 }

</bundles_post_ra>
